<compile_context>
chip_gen: v7x
topology: tpu7x:2x2x1
jax: 0.10.0
libtpu: 0.0.40
codegen_flags: <defaults>
</compile_context>

<pallas_src>
import functools

import jax
import jax.numpy as jnp
from jax.experimental import pallas as pl
from jax.experimental.pallas import tpu as pltpu


def _round_up(v: int, m: int) -> int:
    return (v + m - 1) // m * m


def _sublane(dtype) -> int:
    # sublane packing multiple: f32 -> 8, bf16 -> 16, int8/fp8 -> 32
    return max(8, 32 // jnp.dtype(dtype).itemsize)


def _vmem_tile_bytes(shape, dtype) -> int:
    """VMEM footprint of one tile, including (sublane, 128-lane) padding."""
    dt = jnp.dtype(dtype)
    if len(shape) == 1:
        shape = (1, shape[0])
    *lead, r, c = shape
    n_lead = 1
    for d in lead:
        n_lead *= int(d)
    rp = _round_up(max(int(r), 1), _sublane(dt))
    cp = _round_up(max(int(c), 1), 128)
    return n_lead * rp * cp * dt.itemsize


def _vmem_capacity_bytes() -> int:
    try:
        info = pltpu.get_tpu_info()
        cap = int(getattr(info, "vmem_capacity_bytes", 0) or 0)
        if cap > 0:
            return cap
    except Exception:
        pass
    return 64 << 20  # conservative (v7x-sized) fallback


def _conv3x3s2_kernel(*refs, taps, tp, n_inputs):
    # refs = (x_block_0 .. x_block_{n_inputs-1}, w, bias, out, acc)
    #   x_block: (1, tpin, K)   flattened (haloed) parity pixels
    #   w:       (n_taps, K, tn) per-tap-offset weight matrices
    #   bias:    (1, tn)         f32
    #   out:     (1, tp, tn)     lane-dense output tile
    #   acc:     (tp, tn)        f32 VMEM accumulator
    x_refs = refs[:n_inputs]
    w_ref = refs[n_inputs]
    b_ref = refs[n_inputs + 1]
    o_ref = refs[n_inputs + 2]
    acc_ref = refs[n_inputs + 3]

    last = len(taps) - 1
    for t, (xi, off) in enumerate(taps):
        a = x_refs[xi][0, pl.ds(off, tp), :]                         # (tp, K)
        contrib = jnp.dot(a, w_ref[t], preferred_element_type=jnp.float32)
        if t == last:
            prev = acc_ref[...] if last > 0 else 0.0
            # fused epilogue: last tap + bias + cast + store (no extra acc pass)
            o_ref[0] = (prev + contrib + b_ref[...]).astype(o_ref.dtype)
        elif t == 0:
            acc_ref[...] = contrib
        else:
            acc_ref[...] += contrib


@functools.partial(jax.jit, static_argnames=("mxu_dtype", "force_row_blocks"))
def downsample_pallas(x_nchw, weight_oihw, bias, *, mxu_dtype=None,
                      force_row_blocks=None):
    """Conv2d(C, Cout, kernel=3, stride=2, padding=1) forward, NCHW in/out."""
    n, c, h, w = x_nchw.shape
    cout, cin, kh, kw = weight_oihw.shape
    assert (kh, kw) == (3, 3) and cin == c

    out_dtype = jnp.dtype(x_nchw.dtype)
    cdtype = jnp.dtype(mxu_dtype) if mxu_dtype is not None else out_dtype

    ho = (h - 1) // 2 + 1
    wo = (w - 1) // 2 + 1
    row = wo + 1          # flat-row stride of a decimated parity grid
    halo = row + 1        # largest tap offset

    # --- NHWC + spatial zero pad so even/odd decimation yields (ho+1, wo+1) grids.
    # TODO(synk): accept/emit NHWC directly when the surrounding model allows it;
    # the NCHW<->NHWC transposes around this op are pure layout traffic.
    x = jnp.transpose(x_nchw, (0, 2, 3, 1))
    x = jnp.pad(x, ((0, 0), (1, 2 * ho + 1 - h), (1, 2 * wo + 1 - w), (0, 0)))

    p_full = (ho + 1) * (wo + 1)      # flattened parity-grid pixels
    p_real = ho * (wo + 1)            # output rows kept (incl. one garbage col/row)

    # --- parity decimation (space-to-depth)
    xd = x.reshape(n, ho + 1, 2, wo + 1, 2, c)
    parities = (xd[:, :, 0, :, 0, :], xd[:, :, 0, :, 1, :],   # ee, eo
                xd[:, :, 1, :, 0, :], xd[:, :, 1, :, 1, :])   # oe, oo

    small_c = c <= 64
    if small_c:
        x_arrays = [jnp.concatenate(parities, axis=-1).reshape(n, p_full, 4 * c)]
        k_dim = 4 * c
    else:
        x_arrays = [p.reshape(n, p_full, c) for p in parities]
        k_dim = c
    x_arrays = [a.astype(cdtype) for a in x_arrays]
    n_inputs = len(x_arrays)

    # --- weights / bias: per-tap-offset matrices, Cout padded lane-dense
    coutp = _round_up(cout, 128)
    tn = 256 if coutp % 256 == 0 else 128
    j_steps = coutp // tn

    w_kkio = jnp.transpose(weight_oihw, (2, 3, 1, 0))          # (3, 3, c, cout)
    if small_c:
        z = jnp.zeros((c, cout), w_kkio.dtype)
        w_taps = jnp.stack([
            jnp.concatenate([w_kkio[0, 0], w_kkio[0, 1], w_kkio[1, 0], w_kkio[1, 1]], 0),
            jnp.concatenate([w_kkio[0, 2], z,            w_kkio[1, 2], z           ], 0),
            jnp.concatenate([w_kkio[2, 0], w_kkio[2, 1], z,            z           ], 0),
            jnp.concatenate([w_kkio[2, 2], z,            z,            z           ], 0),
        ], axis=0)                                             # (4, 4c, cout)
        taps = ((0, 0), (0, 1), (0, row), (0, row + 1))
    else:
        w_taps = w_kkio.reshape(9, c, cout)                    # t = kh*3 + kw
        # (parity array index, flat offset); ee=0, eo=1, oe=2, oo=3
        taps = ((0, 0), (1, 0), (0, 1),
                (2, 0), (3, 0), (2, 1),
                (0, row), (1, row), (0, row + 1))
    n_taps = len(taps)
    w_taps = jnp.pad(w_taps, ((0, 0), (0, 0), (0, coutp - cout))).astype(cdtype)
    b2d = jnp.pad(bias.astype(jnp.float32), (0, coutp - cout)).reshape(1, coutp)

    # --- spatial (output-row) tiling: largest row tile whose tiled footprint fits VMEM
    out_sub = _sublane(out_dtype)
    cap = _vmem_capacity_bytes()
    vmem_ceiling = (100 << 20) if cap >= (128 << 20) else max(cap - (16 << 20), 32 << 20)
    tile_budget = vmem_ceiling - (4 << 20)

    def step_need(tp_, tpin_):
        need = n_inputs * _vmem_tile_bytes((1, tpin_, k_dim), cdtype) * 2   # inputs (dbl buf)
        need += _vmem_tile_bytes((n_taps, k_dim, tn), cdtype) * 2           # weights
        need += _vmem_tile_bytes((1, tn), jnp.float32) * 2                  # bias
        need += _vmem_tile_bytes((1, tp_, tn), out_dtype) * 2               # output
        need += _vmem_tile_bytes((tp_, tn), jnp.float32)                    # accumulator
        return need

    if force_row_blocks is not None:
        rb = max(1, int(force_row_blocks))
    elif n * j_steps >= 2 or p_real < 2 * out_sub:
        rb = 1
    else:
        rb = 2  # give the dual-TC chip (v7x) at least 2 parallel grid steps

    while True:
        tp = _round_up(-(-p_real // rb), out_sub)
        tpin = _round_up(tp + halo, 8)
        need = step_need(tp, tpin)
        if need <= tile_budget or tp <= out_sub:
            break
        rb += 1
    n_rblocks = max(1, -(-p_real // tp))
    vmem_limit = int(min(max(need + (4 << 20), 32 << 20), vmem_ceiling))

    # --- pad / halo-block the flattened parity arrays
    rows_needed = (n_rblocks - 1) * tp + tpin

    def block_rows(a):
        a = jnp.pad(a, ((0, 0), (0, rows_needed - p_full), (0, 0)))
        if n_rblocks == 1:
            return a                                           # (n, tpin, K)
        idx = jnp.arange(n_rblocks)[:, None] * tp + jnp.arange(tpin)[None, :]
        return a[:, idx, :].reshape(n * n_rblocks, tpin, a.shape[-1])

    x_blocks = [block_rows(a) for a in x_arrays]

    # --- grid order: keep the operand that would otherwise be re-read the most outermost
    itm = cdtype.itemsize
    input_hbm = sum(int(a.size) for a in x_blocks) * itm
    weight_hbm = int(w_taps.size) * itm
    br_steps = n * n_rblocks
    weights_outer = (j_steps - 1) * input_hbm <= (br_steps - 1) * weight_hbm

    if weights_outer:
        grid = (j_steps, n, n_rblocks)

        def reorder(f):
            return lambda j, b, r: f(b, r, j)
    else:
        grid = (n, n_rblocks, j_steps)

        def reorder(f):
            return lambda b, r, j: f(b, r, j)

    in_specs = [pl.BlockSpec((1, tpin, k_dim),
                             reorder(lambda b, r, j: (b * n_rblocks + r, 0, 0)))
                for _ in range(n_inputs)]
    in_specs += [
        pl.BlockSpec((n_taps, k_dim, tn), reorder(lambda b, r, j: (0, 0, j))),
        pl.BlockSpec((1, tn), reorder(lambda b, r, j: (0, j))),
    ]
    out_spec = pl.BlockSpec((1, tp, tn), reorder(lambda b, r, j: (b, r, j)))

    kernel = functools.partial(_conv3x3s2_kernel, taps=taps, tp=tp, n_inputs=n_inputs)

    out_flat = pl.pallas_call(
        kernel,
        out_shape=jax.ShapeDtypeStruct((n, n_rblocks * tp, coutp), out_dtype),
        grid_spec=pltpu.PrefetchScalarGridSpec(
            num_scalar_prefetch=0,
            grid=grid,
            in_specs=in_specs,
            out_specs=out_spec,
            scratch_shapes=[pltpu.VMEM((tp, tn), jnp.float32)],
        ),
        compiler_params=pltpu.CompilerParams(
            dimension_semantics=("parallel", "parallel", "parallel"),
            vmem_limit_bytes=vmem_limit,
        ),
    )(*x_blocks, w_taps, b2d)

    # (n, rows, coutp) -> (n, cout, ho, wo); padded garbage rows/lanes sliced off
    out = out_flat[:, :p_real, :cout].reshape(n, ho, wo + 1, cout)[:, :, :wo, :]
    return jnp.transpose(out, (0, 3, 1, 2))


def init_downsample_params(key, channels, out_channels=None, dtype=jnp.float32):
    out_channels = out_channels or channels
    kw_, kb = jax.random.split(key)
    fan_in = channels * 3 * 3
    bound = 1.0 / (fan_in ** 0.5)  # PyTorch Conv2d default init range
    weight = jax.random.uniform(kw_, (out_channels, channels, 3, 3),
                                minval=-bound, maxval=bound, dtype=dtype)
    bias = jax.random.uniform(kb, (out_channels,),
                              minval=-bound, maxval=bound, dtype=dtype)
    return weight, bias


def _reference(x, weight, bias):
    cout = weight.shape[0]
    return jax.lax.conv_general_dilated(
        x, weight, window_strides=(2, 2), padding=((1, 1), (1, 1)),
        dimension_numbers=("NCHW", "OIHW", "NCHW"),
    ) + bias.reshape(1, cout, 1, 1)


def _check(x, weight, bias, atol=1e-4, rtol=1e-4, **kw):
    out = jax.block_until_ready(downsample_pallas(x, weight, bias, **kw))
    ref = jax.block_until_ready(_reference(x, weight, bias))
    assert out.shape == ref.shape, (out.shape, ref.shape)
    err = float(jnp.max(jnp.abs(out - ref)))
    assert jnp.allclose(out, ref, atol=atol, rtol=rtol), err
    return out


if __name__ == "__main__":
    key = jax.random.PRNGKey(0)
    k1, k2, k3, k4, k5, k6, k7, k8 = jax.random.split(key, 8)

    # 1) module-spec shape: packed (K=4C) path, whole-image, batch-parallel grid
    x1 = jax.random.normal(k1, (2, 4, 16, 16), dtype=jnp.float32)
    w1, b1 = init_downsample_params(k2, 4, 4)
    out1 = _check(x1, w1, b1)
    assert out1.shape == (2, 4, 8, 8), out1.shape

    # 2) odd spatial size + Cout > 128: exercises Cout grid tiling / grid-order choice
    x2 = jax.random.normal(k3, (1, 8, 11, 10), dtype=jnp.float32)
    w2, b2 = init_downsample_params(k4, 8, 384)
    _check(x2, w2, b2)

    # 3) larger C: unpacked 9-tap path + automatic spatial row tiling (>= 2 grid steps)
    x3 = jax.random.normal(k5, (1, 128, 12, 12), dtype=jnp.float32)
    w3, b3 = init_downsample_params(k6, 128, 128)
    _check(x3, w3, b3)

    # 4) forced halo row-tiling path (v7x-style spatial grid axis)
    x4 = jax.random.normal(k7, (1, 4, 32, 32), dtype=jnp.float32)
    w4, b4 = init_downsample_params(k8, 4, 8)
    _check(x4, w4, b4, force_row_blocks=3)

    # 5) optional bf16 MXU operands (f32 accumulate) -- looser tolerance
    _check(x1, w1, b1, atol=2e-2, rtol=2e-2, mxu_dtype=jnp.bfloat16)

    print("KERNEL_OK")
</pallas_src>

<mosaic_0001>
module attributes {stable_mosaic.version = 11 : i64} {
  func.func @_conv3x3s2_kernel(%arg0: i32, %arg1: i32, %arg2: i32, %arg3: memref<1x88x16xf32, #tpu.memory_space<vmem>>, %arg4: memref<4x16x128xf32, #tpu.memory_space<vmem>>, %arg5: memref<1x128xf32, #tpu.memory_space<vmem>>, %arg6: memref<1x72x128xf32, #tpu.memory_space<vmem>>, %arg7: memref<72x128xf32, #tpu.memory_space<vmem>>) attributes {dimension_semantics = [#tpu.dimension_semantics<parallel>, #tpu.dimension_semantics<parallel>, #tpu.dimension_semantics<parallel>], iteration_bounds = array<i64: 1, 2, 1>, scalar_prefetch = 0 : i64, scratch_operands = 1 : i64, tpu.core_type = #tpu.core_type<tc>, window_params = [{transform_indices = @transform_0, window_bounds = array<i64: 1, 88, 16>}, {transform_indices = @transform_1, window_bounds = array<i64: 4, 16, 128>}, {transform_indices = @transform_2, window_bounds = array<i64: 1, 128>}, {transform_indices = @transform_3, window_bounds = array<i64: 1, 72, 128>}]} {
    %c0 = arith.constant 0 : index
    %c0_0 = arith.constant 0 : index
    %c0_1 = arith.constant 0 : index
    %0 = vector.load %arg3[%c0, %c0_0, %c0_1] : memref<1x88x16xf32, #tpu.memory_space<vmem>>, vector<1x72x16xf32>
    %1 = vector.shape_cast %0 : vector<1x72x16xf32> to vector<72x16xf32>
    %c0_2 = arith.constant 0 : index
    %c0_3 = arith.constant 0 : index
    %c0_4 = arith.constant 0 : index
    %2 = vector.load %arg4[%c0_2, %c0_3, %c0_4] : memref<4x16x128xf32, #tpu.memory_space<vmem>>, vector<1x16x128xf32>
    %3 = vector.shape_cast %2 : vector<1x16x128xf32> to vector<16x128xf32>
    %cst = arith.constant dense<0.000000e+00> : vector<72x128xf32>
    %4 = tpu.matmul %1, %3, %cst {dimension_numbers = #tpu.dot_dimension_numbers<[1], [0], [0], [1], [0, 0, 1, 1], [], []>} : vector<72x16xf32>, vector<16x128xf32>, vector<72x128xf32> -> vector<72x128xf32>
    %c0_5 = arith.constant 0 : index
    %c0_6 = arith.constant 0 : index
    %5 = vector.load %arg7[%c0_5, %c0_6] : memref<72x128xf32, #tpu.memory_space<vmem>>, vector<72x128xf32>
    tpu.vector_store %arg7[%c0_5, %c0_6], %4 {strides = array<i32>} : memref<72x128xf32, #tpu.memory_space<vmem>>, vector<72x128xf32>,
    %c0_7 = arith.constant 0 : index
    %c1 = arith.constant 1 : index
    %c0_8 = arith.constant 0 : index
    %6 = vector.load %arg3[%c0_7, %c1, %c0_8] : memref<1x88x16xf32, #tpu.memory_space<vmem>>, vector<1x72x16xf32>
    %7 = vector.shape_cast %6 : vector<1x72x16xf32> to vector<72x16xf32>
    %c1_9 = arith.constant 1 : index
    %c0_10 = arith.constant 0 : index
    %c0_11 = arith.constant 0 : index
    %8 = vector.load %arg4[%c1_9, %c0_10, %c0_11] : memref<4x16x128xf32, #tpu.memory_space<vmem>>, vector<1x16x128xf32>
    %9 = vector.shape_cast %8 : vector<1x16x128xf32> to vector<16x128xf32>
    %cst_12 = arith.constant dense<0.000000e+00> : vector<72x128xf32>
    %10 = tpu.matmul %7, %9, %cst_12 {dimension_numbers = #tpu.dot_dimension_numbers<[1], [0], [0], [1], [0, 0, 1, 1], [], []>} : vector<72x16xf32>, vector<16x128xf32>, vector<72x128xf32> -> vector<72x128xf32>
    %c0_13 = arith.constant 0 : index
    %c0_14 = arith.constant 0 : index
    %11 = vector.load %arg7[%c0_13, %c0_14] : memref<72x128xf32, #tpu.memory_space<vmem>>, vector<72x128xf32>
    %12 = arith.addf %11, %10 : vector<72x128xf32>
    %c0_15 = arith.constant 0 : index
    %c0_16 = arith.constant 0 : index
    %13 = vector.load %arg7[%c0_15, %c0_16] : memref<72x128xf32, #tpu.memory_space<vmem>>, vector<72x128xf32>
    tpu.vector_store %arg7[%c0_15, %c0_16], %12 {strides = array<i32>} : memref<72x128xf32, #tpu.memory_space<vmem>>, vector<72x128xf32>,
    %c0_17 = arith.constant 0 : index
    %c9 = arith.constant 9 : index
    %c0_18 = arith.constant 0 : index
    %14 = vector.load %arg3[%c0_17, %c9, %c0_18] : memref<1x88x16xf32, #tpu.memory_space<vmem>>, vector<1x72x16xf32>
    %15 = vector.shape_cast %14 : vector<1x72x16xf32> to vector<72x16xf32>
    %c2 = arith.constant 2 : index
    %c0_19 = arith.constant 0 : index
    %c0_20 = arith.constant 0 : index
    %16 = vector.load %arg4[%c2, %c0_19, %c0_20] : memref<4x16x128xf32, #tpu.memory_space<vmem>>, vector<1x16x128xf32>
    %17 = vector.shape_cast %16 : vector<1x16x128xf32> to vector<16x128xf32>
    %cst_21 = arith.constant dense<0.000000e+00> : vector<72x128xf32>
    %18 = tpu.matmul %15, %17, %cst_21 {dimension_numbers = #tpu.dot_dimension_numbers<[1], [0], [0], [1], [0, 0, 1, 1], [], []>} : vector<72x16xf32>, vector<16x128xf32>, vector<72x128xf32> -> vector<72x128xf32>
    %c0_22 = arith.constant 0 : index
    %c0_23 = arith.constant 0 : index
    %19 = vector.load %arg7[%c0_22, %c0_23] : memref<72x128xf32, #tpu.memory_space<vmem>>, vector<72x128xf32>
    %20 = arith.addf %19, %18 : vector<72x128xf32>
    %c0_24 = arith.constant 0 : index
    %c0_25 = arith.constant 0 : index
    %21 = vector.load %arg7[%c0_24, %c0_25] : memref<72x128xf32, #tpu.memory_space<vmem>>, vector<72x128xf32>
    tpu.vector_store %arg7[%c0_24, %c0_25], %20 {strides = array<i32>} : memref<72x128xf32, #tpu.memory_space<vmem>>, vector<72x128xf32>,
    %c0_26 = arith.constant 0 : index
    %c10 = arith.constant 10 : index
    %c0_27 = arith.constant 0 : index
    %22 = vector.load %arg3[%c0_26, %c10, %c0_27] : memref<1x88x16xf32, #tpu.memory_space<vmem>>, vector<1x72x16xf32>
    %23 = vector.shape_cast %22 : vector<1x72x16xf32> to vector<72x16xf32>
    %c3 = arith.constant 3 : index
    %c0_28 = arith.constant 0 : index
    %c0_29 = arith.constant 0 : index
    %24 = vector.load %arg4[%c3, %c0_28, %c0_29] : memref<4x16x128xf32, #tpu.memory_space<vmem>>, vector<1x16x128xf32>
    %25 = vector.shape_cast %24 : vector<1x16x128xf32> to vector<16x128xf32>
    %cst_30 = arith.constant dense<0.000000e+00> : vector<72x128xf32>
    %26 = tpu.matmul %23, %25, %cst_30 {dimension_numbers = #tpu.dot_dimension_numbers<[1], [0], [0], [1], [0, 0, 1, 1], [], []>} : vector<72x16xf32>, vector<16x128xf32>, vector<72x128xf32> -> vector<72x128xf32>
    %c0_31 = arith.constant 0 : index
    %c0_32 = arith.constant 0 : index
    %27 = vector.load %arg7[%c0_31, %c0_32] : memref<72x128xf32, #tpu.memory_space<vmem>>, vector<72x128xf32>
    %28 = arith.addf %27, %26 : vector<72x128xf32>
    %c0_33 = arith.constant 0 : index
    %c0_34 = arith.constant 0 : index
    %29 = vector.load %arg5[%c0_33, %c0_34] : memref<1x128xf32, #tpu.memory_space<vmem>>, vector<1x128xf32>
    %30 = vector.broadcast %29 : vector<1x128xf32> to vector<72x128xf32>
    %31 = arith.addf %28, %30 : vector<72x128xf32>
    %c0_35 = arith.constant 0 : index
    %c0_36 = arith.constant 0 : index
    %c0_37 = arith.constant 0 : index
    %32 = vector.load %arg6[%c0_35, %c0_36, %c0_37] : memref<1x72x128xf32, #tpu.memory_space<vmem>>, vector<1x72x128xf32>
    %33 = vector.shape_cast %32 : vector<1x72x128xf32> to vector<72x128xf32>
    %34 = vector.shape_cast %31 : vector<72x128xf32> to vector<1x72x128xf32>
    tpu.vector_store %arg6[%c0_35, %c0_36, %c0_37], %34 {strides = array<i32>} : memref<1x72x128xf32, #tpu.memory_space<vmem>>, vector<1x72x128xf32>,
    return
  }
  func.func @transform_0(%arg0: i32, %arg1: i32, %arg2: i32) -> (i32, i32, i32) {
    %c1_i32 = arith.constant 1 : i32
    %0 = arith.muli %arg1, %c1_i32 : i32
    %1 = arith.addi %0, %arg2 : i32
    %c0_i32 = arith.constant 0 : i32
    %c0_i32_0 = arith.constant 0 : i32
    %c0_i32_1 = arith.constant 0 : i32
    return %1, %c0_i32, %c0_i32_0 : i32, i32, i32
  }
  func.func @transform_1(%arg0: i32, %arg1: i32, %arg2: i32) -> (i32, i32, i32) {
    %c0_i32 = arith.constant 0 : i32
    %c0_i32_0 = arith.constant 0 : i32
    %c0_i32_1 = arith.constant 0 : i32
    return %c0_i32, %c0_i32_0, %arg0 : i32, i32, i32
  }
  func.func @transform_2(%arg0: i32, %arg1: i32, %arg2: i32) -> (i32, i32) {
    %c0_i32 = arith.constant 0 : i32
    %c0_i32_0 = arith.constant 0 : i32
    return %c0_i32, %arg0 : i32, i32
  }
  func.func @transform_3(%arg0: i32, %arg1: i32, %arg2: i32) -> (i32, i32, i32) {
    %c0_i32 = arith.constant 0 : i32
    return %arg1, %arg2, %arg0 : i32, i32, i32
  }
}

</mosaic_0001>

<bundles_post_ra>
// kernel: downsample_pallas.1
= control target key start
LH: loop header
LB: loop body
LE: loop exit
PB: predicated region body
PF: predicated region fallthrough
CT: control target
= control target key end

     0   :  { %s1380_s12 = smov 0   ;;  %s1382_s13 = smov 0   ;;  %s1613_s0 = inlined_call_operand.vmem [shape: f32[2,88,16], index: 0, kind: input, shape index: {}]   ;;  %s1614_s1 = inlined_call_operand.vmem [shape: f32[4,16,128], index: 1, kind: input, shape index: {}]   ;;  %s1615_s2 = inlined_call_operand.vmem [shape: f32[1,128], index: 2, kind: input, shape index: {}]   ;;  %s1616_s3 = inlined_call_operand.vmem [shape: f32[2,72,128], index: 3, kind: output, shape index: {}]  }
   0x1   :  { %s1384_s14 = smov 0  }
   0x2 LB: > { %s28_s15 = sadd.s32 1, %s1351_s13  ;;  %p1076_p0 = scmp.ge.s32.totalorder %s1355_s14, 1  ;;  %s1355_s14 = sphi %s1384_s14, %s13_s14   ;;  %s1351_s13 = sphi %s1382_s13, %s1618_s13   ;;  %s1347_s12 = sphi %s1380_s12, %s1617_s12  }
   0x3   : > { %p30_p1 = scmp.ge.s32.totalorder %s28_s15, 2  ;;  %p181_p2 = scmp.lt.s32.totalorder %s1355_s14, 3 }
   0x5   : > { %s1620_s15 = smov (%p30_p1, %s28_s15), 0  ;;  %p182_p3 = pnand %p1076_p0, %p181_p2 }
   0x6   : > { %v256_v0 = vld [vmem:[%s1614_s1] sm:$0xff] (!%p182_p3)  ;;  %v257_v1 = vld [vmem:[%s1614_s1 + $0x8] sm:$0xff] (!%p182_p3)  ;;  %v1088_v2 = vld [vmem:[%s1614_s1 + $0x10] sm:$0xff] (!%p182_p3)  ;;  %v1357_v3 = vmov (!%p182_p3), 0.0|0.0   ;;  %p221_p4 = scmp.lt.s32.totalorder (!%p182_p3), %s1347_s12, 1  ;;  %vm1358_vm0 = vmmov (!%p182_p3), 0  }
   0x7   : > { %185 = sbr.rel (%p182_p3) target bundleno = 306 (0x132), region = 32  ;;  %1292 = vmatprep.subr.bf16.mxu0 (!%p182_p3), %v1357_v3  ;;  %v1293_v4 = vpack.c.bf16 (!%p182_p3), %v257_v1, %v256_v0  ;;  %1295 = vmatprep.subr.bf16.mxu1 (!%p182_p3), %v1357_v3  ;;  %v1089_v5 = vld [vmem:[%s1614_s1 + $0x18] sm:$0xff] (!%p182_p3)  ;;  %v1359_v7 = vmov (!%p182_p3), 0.0   ;;  %v1099_v8 = vld [vmem:[%s1614_s1 + $0x20] sm:$0xff] (!%p182_p3)  ;;  %v1100_v9 = vld [vmem:[%s1614_s1 + $0x28] sm:$0xff] (!%p182_p3)  ;;  %vm258_vm1 = vcmask (!%p182_p3), 130048  }
   0x8   : > { %v1296_v6 = vpack.c.bf16 (!%p182_p3), %v1089_v5, %v1088_v2  ;;  %1172 = vmatprep.mubr.msk.f32.mxu0 (!%p182_p3), %vm1358_vm0, %v1359_v7  ;;  %1203 = vmatprep.mubr.msk.f32.mxu1 (!%p182_p3), %vm1358_vm0, %v1359_v7  ;;  %v1110_v10 = vld [vmem:[%s1614_s1 + $0x30] sm:$0xff] (!%p182_p3)  ;;  %v1111_v11 = vld [vmem:[%s1614_s1 + $0x38] sm:$0xff] (!%p182_p3)  ;;  %v1299_v12 = vpack.c.bf16 (!%p182_p3), %v1100_v9, %v1099_v8 }
   0x9   : > { %1294 = vmatpush3.bf16.msra.mxu0 (!%p182_p3), %v1293_v4  ;;  %v1302_v13 = vpack.c.bf16 (!%p182_p3), %v1111_v11, %v1110_v10 }
   0xa   : > { %1297 = vmatpush3.bf16.msra.mxu1 (!%p182_p3), %v1296_v6  ;;  %1298 = vmatprep.subr.bf16.mxu0 (!%p182_p3), %v1357_v3 }
   0xb   : > { %1301 = vmatprep.subr.bf16.mxu1 (!%p182_p3), %v1357_v3 }
   0xe   : > { %s1622_s12 = smov (!%p221_p4, %s1347_s12), 1 }
   0xf   : > { %s1304_s5 = smul.u32 88, %s1622_s12 }
  0x10   : > { %s1305_s9 = smul.u32 72, %s1622_s12 }
  0x11   : > { %s1432_s8 = scalar_lea.vmem %s1613_s0, %s1304_s5 }
  0x12   : > { %v247_v14 = vld [vmem:[%s1432_s8] sm:$0xff]  ;;  %v248_v16 = vld [vmem:[%s1432_s8 + $0x8] sm:$0xff]  ;;  %v249_v18 = vld [vmem:[%s1432_s8 + $0x10] sm:$0xff]  ;;  %s1581_s18 = scalar_lea.vmem %s1616_s3, %s1305_s9 }
  0x13   : > { %v405_v15 = vld [vmem:[%s1432_s8 + $0x1] sm:$0xff]  ;;  %1173 = vmatmul.mubr.msk.f32.vlgmr.msra.gmra.mrb[0].mxu0 %vm258_vm1, %v247_v14  ;;  %v406_v17 = vld [vmem:[%s1432_s8 + $0x9] sm:$0xff]  ;;  %v407_v19 = vld [vmem:[%s1432_s8 + $0x11] sm:$0xff] }
  0x14   : > { %1204 = vmatmul.mubr.msk.f32.vlgmr.msra.gmra.mrb[0].mxu1 %vm258_vm1, %v405_v15  ;;  %1300 = vmatpush3.bf16.msra.mxu0 %v1299_v12  ;;  %v250_v20 = vld [vmem:[%s1432_s8 + $0x18] sm:$0xff]  ;;  %v251_v22 = vld [vmem:[%s1432_s8 + $0x20] sm:$0xff]  ;;  %v252_v24 = vld [vmem:[%s1432_s8 + $0x28] sm:$0xff] }
  0x15   : > { %1303 = vmatpush3.bf16.msra.mxu1 %v1302_v13  ;;  %1175 = vmatprep.mubr.msk.f32.mxu0 %vm1358_vm0, %v1359_v7  ;;  %v408_v21 = vld [vmem:[%s1432_s8 + $0x19] sm:$0xff]  ;;  %v409_v23 = vld [vmem:[%s1432_s8 + $0x21] sm:$0xff]  ;;  %v410_v25 = vld [vmem:[%s1432_s8 + $0x29] sm:$0xff] }
  0x16   : > { %1206 = vmatprep.mubr.msk.f32.mxu1 %vm1358_vm0, %v1359_v7  ;;  %v253_v26 = vld [vmem:[%s1432_s8 + $0x30] sm:$0xff]  ;;  %v254_v28 = vld [vmem:[%s1432_s8 + $0x38] sm:$0xff]  ;;  %v255_v30 = vld [vmem:[%s1432_s8 + $0x40] sm:$0xff] }
  0x17   : > { %1176 = vmatmul.mubr.msk.f32.gmra.mrb[2].mxu0 %vm258_vm1, %v248_v16  ;;  %v411_v27 = vld [vmem:[%s1432_s8 + $0x31] sm:$0xff]  ;;  %v412_v29 = vld [vmem:[%s1432_s8 + $0x39] sm:$0xff]  ;;  %v413_v31 = vld [vmem:[%s1432_s8 + $0x41] sm:$0xff] }
  0x18   : > { %1207 = vmatmul.mubr.msk.f32.gmra.mrb[2].mxu1 %vm258_vm1, %v406_v17  ;;  %1178 = vmatprep.mubr.msk.f32.mxu0 %vm1358_vm0, %v1359_v7  ;;  %v757_v32 = vld [vmem:[%s1432_s8 + $0xa] sm:$0xff]  ;;  %v758_v33 = vld [vmem:[%s1432_s8 + $0x12] sm:$0xff]  ;;  %v759_v34 = vld [vmem:[%s1432_s8 + $0x1a] sm:$0xff] }
  0x19   : > { %1209 = vmatprep.mubr.msk.f32.mxu1 %vm1358_vm0, %v1359_v7  ;;  %v760_v35 = vld [vmem:[%s1432_s8 + $0x22] sm:$0xff]  ;;  %v761_v36 = vld [vmem:[%s1432_s8 + $0x2a] sm:$0xff]  ;;  %v762_v37 = vld [vmem:[%s1432_s8 + $0x32] sm:$0xff] }
  0x1a   : > { %v763_v38 = vld [vmem:[%s1432_s8 + $0x3a] sm:$0xff]  ;;  %v764_v39 = vld [vmem:[%s1432_s8 + $0x42] sm:$0xff]  ;;  %v765_v41 = vld [vmem:[%s1432_s8 + $0x4a] sm:$0xff] }
  0x1b   : > { %1179 = vmatmul.mubr.msk.f32.gmra.mrb[4].mxu0 %vm258_vm1, %v249_v18  ;;  %v589_v40 = vld [vmem:[%s1432_s8 + $0x49] sm:$0xff] }
  0x1c   : > { %1210 = vmatmul.mubr.msk.f32.gmra.mrb[4].mxu1 %vm258_vm1, %v407_v19  ;;  %1181 = vmatprep.mubr.msk.f32.mxu0 %vm1358_vm0, %v1359_v7 }
  0x1d   : > { %1212 = vmatprep.mubr.msk.f32.mxu1 %vm1358_vm0, %v1359_v7 }
  0x1f   : > { %1182 = vmatmul.mubr.msk.f32.gmra.mrb[6].mxu0 %vm258_vm1, %v250_v20 }
  0x20   : > { %1213 = vmatmul.mubr.msk.f32.gmra.mrb[6].mxu1 %vm258_vm1, %v408_v21  ;;  %1184 = vmatprep.mubr.msk.f32.mxu0 %vm1358_vm0, %v1359_v7 }
  0x21   : > { %1215 = vmatprep.mubr.msk.f32.mxu1 %vm1358_vm0, %v1359_v7 }
  0x23   : > { %1185 = vmatmul.mubr.msk.f32.gmra.mrb[8].mxu0 %vm258_vm1, %v251_v22 }
  0x24   : > { %1216 = vmatmul.mubr.msk.f32.gmra.mrb[8].mxu1 %vm258_vm1, %v409_v23  ;;  %1187 = vmatprep.mubr.msk.f32.mxu0 %vm1358_vm0, %v1359_v7 }
  0x25   : > { %1218 = vmatprep.mubr.msk.f32.mxu1 %vm1358_vm0, %v1359_v7 }
  0x27   : > { %1188 = vmatmul.mubr.msk.f32.gmra.mrb[10].mxu0 %vm258_vm1, %v252_v24 }
  0x28   : > { %1219 = vmatmul.mubr.msk.f32.gmra.mrb[10].mxu1 %vm258_vm1, %v410_v25  ;;  %1190 = vmatprep.mubr.msk.f32.mxu0 %vm1358_vm0, %v1359_v7 }
  0x29   : > { %1221 = vmatprep.mubr.msk.f32.mxu1 %vm1358_vm0, %v1359_v7 }
  0x2b   : > { %1191 = vmatmul.mubr.msk.f32.gmra.mrb[12].mxu0 %vm258_vm1, %v253_v26 }
  0x2c   : > { %1222 = vmatmul.mubr.msk.f32.gmra.mrb[12].mxu1 %vm258_vm1, %v411_v27  ;;  %1193 = vmatprep.mubr.msk.f32.mxu0 %vm1358_vm0, %v1359_v7 }
  0x2d   : > { %1224 = vmatprep.mubr.msk.f32.mxu1 %vm1358_vm0, %v1359_v7 }
  0x2f   : > { %1194 = vmatmul.mubr.msk.f32.gmra.mrb[14].mxu0 %vm258_vm1, %v254_v28  ;;  %v1576_v28 = vld [vmem:[%s1615_s2] ss:$0 sm:$0xff] }
  0x30   : > { %1225 = vmatmul.mubr.msk.f32.gmra.mrb[14].mxu1 %vm258_vm1, %v412_v29  ;;  %1196 = vmatprep.mubr.msk.f32.mxu0 %vm1358_vm0, %v1359_v7 }
  0x31   : > { %1227 = vmatprep.mubr.msk.f32.mxu1 %vm1358_vm0, %v1359_v7 }
  0x33   : > { %1197 = vmatmul.mubr.msk.f32.gmra.mrb[16].mxu0 %vm258_vm1, %v255_v30 }
  0x34   : > { %1228 = vmatmul.mubr.msk.f32.gmra.mrb[16].mxu1 %vm258_vm1, %v413_v31  ;;  %1234 = vmatprep.mubr.msk.f32.mxu0 %vm1358_vm0, %v1359_v7 }
  0x35   : > { %1265 = vmatprep.mubr.msk.f32.mxu1 %vm1358_vm0, %v1359_v7 }
  0x37   : > { %1235 = vmatmul.mubr.msk.f32.vlgmr.msra.gmra.mrb[18].mxu0 %vm258_vm1, %v406_v17 }
  0x38   : > { %1266 = vmatmul.mubr.msk.f32.vlgmr.msra.gmra.mrb[18].mxu1 %vm258_vm1, %v757_v32  ;;  %1237 = vmatprep.mubr.msk.f32.mxu0 %vm1358_vm0, %v1359_v7 }
  0x39   : > { %1268 = vmatprep.mubr.msk.f32.mxu1 %vm1358_vm0, %v1359_v7 }
  0x3b   : > { %1238 = vmatmul.mubr.msk.f32.gmra.mrb[20].mxu0 %vm258_vm1, %v407_v19 }
  0x3c   : > { %1269 = vmatmul.mubr.msk.f32.gmra.mrb[20].mxu1 %vm258_vm1, %v758_v33  ;;  %1240 = vmatprep.mubr.msk.f32.mxu0 %vm1358_vm0, %v1359_v7 }
  0x3d   : > { %1271 = vmatprep.mubr.msk.f32.mxu1 %vm1358_vm0, %v1359_v7 }
  0x3f   : > { %1241 = vmatmul.mubr.msk.f32.gmra.mrb[22].mxu0 %vm258_vm1, %v408_v21 }
  0x40   : > { %1272 = vmatmul.mubr.msk.f32.gmra.mrb[22].mxu1 %vm258_vm1, %v759_v34  ;;  %1243 = vmatprep.mubr.msk.f32.mxu0 %vm1358_vm0, %v1359_v7 }
  0x41   : > { %1274 = vmatprep.mubr.msk.f32.mxu1 %vm1358_vm0, %v1359_v7 }
  0x43   : > { %1244 = vmatmul.mubr.msk.f32.gmra.mrb[24].mxu0 %vm258_vm1, %v409_v23 }
  0x44   : > { %1275 = vmatmul.mubr.msk.f32.gmra.mrb[24].mxu1 %vm258_vm1, %v760_v35  ;;  %1246 = vmatprep.mubr.msk.f32.mxu0 %vm1358_vm0, %v1359_v7 }
  0x45   : > { %1277 = vmatprep.mubr.msk.f32.mxu1 %vm1358_vm0, %v1359_v7 }
  0x47   : > { %1247 = vmatmul.mubr.msk.f32.gmra.mrb[26].mxu0 %vm258_vm1, %v410_v25 }
  0x48   : > { %1278 = vmatmul.mubr.msk.f32.gmra.mrb[26].mxu1 %vm258_vm1, %v761_v36  ;;  %1249 = vmatprep.mubr.msk.f32.mxu0 %vm1358_vm0, %v1359_v7 }
  0x49   : > { %1280 = vmatprep.mubr.msk.f32.mxu1 %vm1358_vm0, %v1359_v7 }
  0x4b   : > { %1250 = vmatmul.mubr.msk.f32.gmra.mrb[28].mxu0 %vm258_vm1, %v411_v27 }
  0x4c   : > { %1281 = vmatmul.mubr.msk.f32.gmra.mrb[28].mxu1 %vm258_vm1, %v762_v37  ;;  %1252 = vmatprep.mubr.msk.f32.mxu0 %vm1358_vm0, %v1359_v7 }
  0x4d   : > { %1283 = vmatprep.mubr.msk.f32.mxu1 %vm1358_vm0, %v1359_v7 }
  0x4f   : > { %1253 = vmatmul.mubr.msk.f32.gmra.mrb[30].mxu0 %vm258_vm1, %v412_v29 }
  0x50   : > { %1284 = vmatmul.mubr.msk.f32.gmra.mrb[30].mxu1 %vm258_vm1, %v763_v38  ;;  %1255 = vmatprep.mubr.msk.f32.mxu0 %vm1358_vm0, %v1359_v7 }
  0x51   : > { %1286 = vmatprep.mubr.msk.f32.mxu1 %vm1358_vm0, %v1359_v7 }
  0x53   : > { %1256 = vmatmul.mubr.msk.f32.gmra.mrb[32].mxu0 %vm258_vm1, %v413_v31 }
  0x54   : > { %1287 = vmatmul.mubr.msk.f32.gmra.mrb[32].mxu1 %vm258_vm1, %v764_v39  ;;  %1258 = vmatprep.mubr.msk.f32.mxu0 %vm1358_vm0, %v1359_v7 }
  0x55   : > { %1289 = vmatprep.mubr.msk.f32.mxu1 %vm1358_vm0, %v1359_v7 }
  0x57   : > { %1259 = vmatmul.mubr.msk.f32.gmra.mrb[34].mxu0 %vm258_vm1, %v589_v40 }
  0x58   : > { %1290 = vmatmul.mubr.msk.f32.gmra.mrb[34].mxu1 %vm258_vm1, %v765_v41 }
  0xe6   : > { %v352_v42 = vpop.f32.mrb[0].mxu0 }
  0xe7   : > { %v510_v43 = vpop.f32.mrb[0].mxu1  ;;  %v1174_v45 = vpop.f32.mrb[1].mxu0 }
  0xe8   : > { %v563_v44 = vadd.f32 %v510_v43, %v352_v42  ;;  %v1205_v46 = vpop.f32.mrb[1].mxu1 }
  0xea   : > { %v357_v47 = vpop.f32.mrb[2].mxu0 }
  0xeb   : > { %v515_v48 = vpop.f32.mrb[2].mxu1  ;;  %v1177_v50 = vpop.f32.mrb[3].mxu0 }
  0xec   : > { %v564_v49 = vadd.f32 %v515_v48, %v357_v47  ;;  %v1208_v51 = vpop.f32.mrb[3].mxu1 }
  0xee   : > { %v362_v52 = vpop.f32.mrb[4].mxu0 }
  0xef   : > { %v520_v53 = vpop.f32.mrb[4].mxu1  ;;  %v1180_v55 = vpop.f32.mrb[5].mxu0 }
  0xf0   : > { %v565_v54 = vadd.f32 %v520_v53, %v362_v52  ;;  %v1211_v56 = vpop.f32.mrb[5].mxu1 }
  0xf2   : > { %v367_v57 = vpop.f32.mrb[6].mxu0 }
  0xf3   : > { %v525_v58 = vpop.f32.mrb[6].mxu1  ;;  %v1183_v60 = vpop.f32.mrb[7].mxu0 }
  0xf4   : > { %v566_v59 = vadd.f32 %v525_v58, %v367_v57  ;;  %v1214_v61 = vpop.f32.mrb[7].mxu1 }
  0xf6   : > { %v372_v62 = vpop.f32.mrb[8].mxu0 }
  0xf7   : > { %v530_v63 = vpop.f32.mrb[8].mxu1  ;;  %v1186_v1 = vpop.f32.mrb[9].mxu0 }
  0xf8   : > { %v567_v0 = vadd.f32 %v530_v63, %v372_v62  ;;  %v1217_v2 = vpop.f32.mrb[9].mxu1 }
  0xfa   : > { %v377_v3 = vpop.f32.mrb[10].mxu0 }
  0xfb   : > { %v535_v4 = vpop.f32.mrb[10].mxu1  ;;  %v1189_v6 = vpop.f32.mrb[11].mxu0 }
  0xfc   : > { %v568_v5 = vadd.f32 %v535_v4, %v377_v3  ;;  %v1220_v7 = vpop.f32.mrb[11].mxu1 }
  0xfe   : > { %v382_v8 = vpop.f32.mrb[12].mxu0 }
  0xff   : > { %v540_v9 = vpop.f32.mrb[12].mxu1  ;;  %v1192_v11 = vpop.f32.mrb[13].mxu0 }
 0x100   : > { %v1566_v10 = vadd.f32 %v540_v9, %v382_v8  ;;  %v1223_v12 = vpop.f32.mrb[13].mxu1 }
 0x102   : > { %v387_v13 = vpop.f32.mrb[14].mxu0 }
 0x103   : > { %v545_v14 = vpop.f32.mrb[14].mxu1  ;;  %v1195_v16 = vpop.f32.mrb[15].mxu0 }
 0x104   : > { %v1568_v15 = vadd.f32 %v545_v14, %v387_v13  ;;  %v1226_v17 = vpop.f32.mrb[15].mxu1 }
 0x106   : > { %v392_v18 = vpop.f32.mrb[16].mxu0 }
 0x107   : > { %v550_v19 = vpop.f32.mrb[16].mxu1  ;;  %v1198_v21 = vpop.f32.mrb[17].mxu0 }
 0x108   : > { %v1570_v20 = vadd.f32 %v550_v19, %v392_v18  ;;  %v1229_v22 = vpop.f32.mrb[17].mxu1 }
 0x10a   : > { %v686_v23 = vpop.f32.mrb[18].mxu0 }
 0x10b   : > { %v862_v24 = vpop.f32.mrb[18].mxu1  ;;  %v739_v25 = vadd.f32 %v686_v23, %v563_v44  ;;  %v1236_v26 = vpop.f32.mrb[19].mxu0 }
 0x10c   : > { %v1267_v27 = vpop.f32.mrb[19].mxu1 }
 0x10d   : > { %v915_v29 = vadd.f32 %v862_v24, %v739_v25 }
 0x10e   : > { %v691_v30 = vpop.f32.mrb[20].mxu0 }
 0x10f   : > { %v867_v31 = vpop.f32.mrb[20].mxu1  ;;  %v931_v32 = vadd.f32 %v1576_v28, %v915_v29  ;;  %v740_v33 = vadd.f32 %v691_v30, %v564_v49  ;;  %v1239_v34 = vpop.f32.mrb[21].mxu0 }
 0x110   : > { %v1270_v35 = vpop.f32.mrb[21].mxu1 }
 0x111   : > { %940 = vst [vmem:[%s1581_s18] sm:$0xff] %v931_v32  ;;  %v916_v36 = vadd.f32 %v867_v31, %v740_v33 }
 0x112   : > { %v696_v37 = vpop.f32.mrb[22].mxu0 }
 0x113   : > { %v872_v38 = vpop.f32.mrb[22].mxu1  ;;  %v932_v39 = vadd.f32 %v1576_v28, %v916_v36  ;;  %v741_v40 = vadd.f32 %v696_v37, %v565_v54  ;;  %v1242_v41 = vpop.f32.mrb[23].mxu0 }
 0x114   : > { %v1273_v42 = vpop.f32.mrb[23].mxu1 }
 0x115   : > { %941 = vst [vmem:[%s1581_s18 + $0x8] sm:$0xff] %v932_v39  ;;  %v917_v43 = vadd.f32 %v872_v38, %v741_v40 }
 0x116   : > { %v701_v44 = vpop.f32.mrb[24].mxu0 }
 0x117   : > { %v877_v45 = vpop.f32.mrb[24].mxu1  ;;  %v933_v46 = vadd.f32 %v1576_v28, %v917_v43  ;;  %v742_v47 = vadd.f32 %v701_v44, %v566_v59  ;;  %v1245_v48 = vpop.f32.mrb[25].mxu0 }
 0x118   : > { %v1276_v49 = vpop.f32.mrb[25].mxu1 }
 0x119   : > { %942 = vst [vmem:[%s1581_s18 + $0x10] sm:$0xff] %v933_v46  ;;  %v918_v50 = vadd.f32 %v877_v45, %v742_v47 }
 0x11a   : > { %v706_v51 = vpop.f32.mrb[26].mxu0 }
 0x11b   : > { %v882_v52 = vpop.f32.mrb[26].mxu1  ;;  %v934_v53 = vadd.f32 %v1576_v28, %v918_v50  ;;  %v743_v54 = vadd.f32 %v706_v51, %v567_v0  ;;  %v1248_v55 = vpop.f32.mrb[27].mxu0 }
 0x11c   : > { %v1279_v56 = vpop.f32.mrb[27].mxu1 }
 0x11d   : > { %943 = vst [vmem:[%s1581_s18 + $0x18] sm:$0xff] %v934_v53  ;;  %v919_v57 = vadd.f32 %v882_v52, %v743_v54 }
 0x11e   : > { %v711_v58 = vpop.f32.mrb[28].mxu0 }
 0x11f   : > { %v887_v60 = vpop.f32.mrb[28].mxu1  ;;  %v935_v61 = vadd.f32 %v1576_v28, %v919_v57  ;;  %v744_v59 = vadd.f32 %v711_v58, %v568_v5  ;;  %v1251_v62 = vpop.f32.mrb[29].mxu0 }
 0x120   : > { %v1282_v63 = vpop.f32.mrb[29].mxu1 }
 0x121   : > { %944 = vst [vmem:[%s1581_s18 + $0x20] sm:$0xff] %v935_v61  ;;  %v920_v1 = vadd.f32 %v887_v60, %v744_v59 }
 0x122   : > { %v716_v2 = vpop.f32.mrb[30].mxu0 }
 0x123   : > { %v892_v3 = vpop.f32.mrb[30].mxu1  ;;  %v936_v4 = vadd.f32 %v1576_v28, %v920_v1  ;;  %v745_v0 = vadd.f32 %v716_v2, %v1566_v10  ;;  %v1254_v6 = vpop.f32.mrb[31].mxu0 }
 0x124   : > { %v1285_v7 = vpop.f32.mrb[31].mxu1 }
 0x125   : > { %945 = vst [vmem:[%s1581_s18 + $0x28] sm:$0xff] %v936_v4  ;;  %v921_v8 = vadd.f32 %v892_v3, %v745_v0 }
 0x126   : > { %v721_v9 = vpop.f32.mrb[32].mxu0 }
 0x127   : > { %v897_v11 = vpop.f32.mrb[32].mxu1  ;;  %v937_v5 = vadd.f32 %v1576_v28, %v921_v8  ;;  %v746_v12 = vadd.f32 %v721_v9, %v1568_v15  ;;  %v1257_v13 = vpop.f32.mrb[33].mxu0 }
 0x128   : > { %v1288_v14 = vpop.f32.mrb[33].mxu1 }
 0x129   : > { %946 = vst [vmem:[%s1581_s18 + $0x30] sm:$0xff] %v937_v5  ;;  %v922_v16 = vadd.f32 %v897_v11, %v746_v12 }
 0x12a   : > { %v726_v17 = vpop.f32.mrb[34].mxu0 }
 0x12b   : > { %v902_v18 = vpop.f32.mrb[34].mxu1  ;;  %v938_v10 = vadd.f32 %v1576_v28, %v922_v16  ;;  %v747_v19 = vadd.f32 %v726_v17, %v1570_v20  ;;  %v1260_v21 = vpop.f32.mrb[35].mxu0 }
 0x12c   : > { %v1291_v22 = vpop.f32.mrb[35].mxu1 }
 0x12d   : > { %947 = vst [vmem:[%s1581_s18 + $0x38] sm:$0xff] %v938_v10  ;;  %v923_v23 = vadd.f32 %v902_v18, %v747_v19 }
 0x12f   : > { %v939_v24 = vadd.f32 %v1576_v28, %v923_v23 }
 0x131   : > { %948 = vst [vmem:[%s1581_s18 + $0x40] sm:$0xff] %v939_v24 }
 0x132 PF: > { %s13_s14 = sadd.s32 1, %s1355_s14   ;;  %s1617_s12 = smov %s1351_s13 }
 0x133   : > { %p10_p5 = scmp.ge.s32.totalorder %s13_s14, 4   ;;  %s1618_s13 = smov %s1620_s15 }
 0x135   :  { %12 = sbr.rel (!%p10_p5) target bundleno = 2 (0x2), region = 71 }

</bundles_post_ra>
